<compile_context>
chip_gen: v7x
topology: tpu7x:2x2x1
jax: 0.10.0
libtpu: 0.0.40
codegen_flags: <defaults>
</compile_context>

<pallas_src>
import functools
import numpy as np
import jax
import jax.numpy as jnp
from jax import lax
from jax.experimental import pallas as pl
from jax.experimental.pallas import tpu as pltpu


def _round_up(a, b):
    return (a + b - 1) // b * b


def _conv_mm_kernel(p_ref, w_ref, b_ref, o_ref):
    # p_ref: (TILE_T, K*C_in)   im2col patch rows (compute dtype)
    # w_ref: (K*C_in, TILE_N)   weight slab       (compute dtype)
    # b_ref: (1, TILE_N)        bias              (float32)
    # o_ref: (TILE_T, TILE_N)
    acc = jnp.dot(p_ref[...], w_ref[...], preferred_element_type=jnp.float32)
    acc = acc + b_ref[...]                    # (1, TILE_N) broadcasts over rows
    o_ref[...] = acc.astype(o_ref.dtype)


def conv_forward(x, weight, bias, *, stride=1, padding=0, dilation=1,
                 compute_dtype=jnp.bfloat16, row_tile=256, n_tile_max=512):
    """Equivalent of Conv.forward: x (B, T, C_in) -> (B, T_out, C_out).

    weight: (C_out, C_in, K)  (PyTorch nn.Conv1d layout)
    bias:   (C_out,)
    """
    B, T, C_in = x.shape
    C_out, C_in_w, K = weight.shape
    assert C_in == C_in_w
    T_padded = T + 2 * padding
    T_out = (T_padded - dilation * (K - 1) - 1) // stride + 1
    assert T_out > 0

    # ---------------- HBM-side glue (XLA): pad, im2col, pre-stride, cast -------
    x_pad = jnp.pad(x, ((0, 0), (padding, padding), (0, 0)))
    taps = [lax.slice(x_pad,
                      (0, k * dilation, 0),
                      (B, k * dilation + (T_out - 1) * stride + 1, C_in),
                      (1, stride, 1))
            for k in range(K)]                            # each (B, T_out, C_in)
    patches = jnp.concatenate(taps, axis=-1)              # (B, T_out, K*C_in)
    KC = K * C_in

    # Fold batch into rows (MXU M dim = B*T_out), pad rows to the row tile.
    rows = B * T_out
    tile_t = row_tile if rows >= row_tile else _round_up(rows, 8)
    rows_pad = _round_up(rows, tile_t)
    p2 = patches.reshape(rows, KC)
    if rows_pad != rows:
        p2 = jnp.pad(p2, ((0, rows_pad - rows), (0, 0)))

    # Lane-dense output: pad C_out to a multiple of 128 (and of the N tile).
    c_out_pad = _round_up(C_out, 128)
    tile_n = c_out_pad if c_out_pad <= n_tile_max else n_tile_max
    c_out_pad = _round_up(c_out_pad, tile_n)

    w2 = jnp.transpose(weight, (2, 1, 0)).reshape(KC, C_out)   # (K*C_in, C_out)
    b2 = bias.astype(jnp.float32).reshape(1, C_out)
    if c_out_pad != C_out:
        w2 = jnp.pad(w2, ((0, 0), (0, c_out_pad - C_out)))
        b2 = jnp.pad(b2, ((0, 0), (0, c_out_pad - C_out)))

    # bf16 MXU feed (f32 accumulate in-kernel); no-op for compute_dtype=float32.
    p2 = p2.astype(compute_dtype)
    w2 = w2.astype(compute_dtype)

    # Grid: N (weight slab) outer, rows inner -> weight block index is constant
    # across the inner axis and stays resident; patches stream.
    grid = (c_out_pad // tile_n, rows_pad // tile_t)

    out2 = pl.pallas_call(
        _conv_mm_kernel,
        out_shape=jax.ShapeDtypeStruct((rows_pad, c_out_pad), x.dtype),
        grid_spec=pltpu.PrefetchScalarGridSpec(
            num_scalar_prefetch=0,
            grid=grid,
            in_specs=[
                pl.BlockSpec((tile_t, KC), lambda j, i: (i, 0)),
                pl.BlockSpec((KC, tile_n), lambda j, i: (0, j)),
                pl.BlockSpec((1, tile_n), lambda j, i: (0, j)),
            ],
            out_specs=pl.BlockSpec((tile_t, tile_n), lambda j, i: (i, j)),
        ),
        compiler_params=pltpu.CompilerParams(
            dimension_semantics=("parallel", "parallel"),
            vmem_limit_bytes=32 * 1024 * 1024),
    )(p2, w2, b2)

    return out2[:rows, :C_out].reshape(B, T_out, C_out)


def init_conv_params(key, in_channels, out_channels, kernel_size):
    """Deterministic xavier-uniform weight + PyTorch-default uniform bias."""
    kw, kb = jax.random.split(key)
    fan_in = in_channels * kernel_size
    fan_out = out_channels * kernel_size
    limit = np.sqrt(6.0 / (fan_in + fan_out))      # xavier, gain('linear') = 1
    weight = jax.random.uniform(kw, (out_channels, in_channels, kernel_size),
                                jnp.float32, minval=-limit, maxval=limit)
    b_lim = 1.0 / np.sqrt(fan_in)
    bias = jax.random.uniform(kb, (out_channels,), jnp.float32,
                              minval=-b_lim, maxval=b_lim)
    return weight, bias


def _reference(x, weight, bias, *, stride, padding, dilation):
    ref = lax.conv_general_dilated(
        jnp.transpose(x, (0, 2, 1)),               # (B, C_in, T)
        weight,                                    # (C_out, C_in, K)
        window_strides=(stride,),
        padding=((padding, padding),),
        rhs_dilation=(dilation,),
        dimension_numbers=("NCH", "OIH", "NCH"),
    )
    return jnp.transpose(ref, (0, 2, 1)) + bias[None, None, :]


if __name__ == "__main__":
    # Shapes consistent with the duration-predictor usage:
    # batch=2, seq=16, in_channels=32, out_channels=32, kernel_size=3, padding=1
    B, T, C_in, C_out, K = 2, 16, 32, 32, 3
    stride, padding, dilation = 1, 1, 1

    key = jax.random.PRNGKey(0)
    kx, kp = jax.random.split(key)
    x = jax.random.normal(kx, (B, T, C_in), jnp.float32)
    weight, bias = init_conv_params(kp, C_in, C_out, K)

    ref = _reference(x, weight, bias, stride=stride, padding=padding,
                     dilation=dilation)

    # 1) f32 MXU path: tight numerical check.
    out_f32 = conv_forward(x, weight, bias, stride=stride, padding=padding,
                           dilation=dilation, compute_dtype=jnp.float32)
    out_f32 = jax.block_until_ready(out_f32)
    assert out_f32.shape == ref.shape
    np.testing.assert_allclose(np.asarray(out_f32), np.asarray(ref),
                               rtol=1e-5, atol=1e-5)

    # 2) bf16 MXU path (default, f32 accumulation): loose numerical check.
    out_bf16 = conv_forward(x, weight, bias, stride=stride, padding=padding,
                            dilation=dilation, compute_dtype=jnp.bfloat16)
    out_bf16 = jax.block_until_ready(out_bf16)
    np.testing.assert_allclose(np.asarray(out_bf16), np.asarray(ref),
                               rtol=5e-2, atol=5e-2)

    # 3) Exercise stride / dilation generality (f32 path, tight check).
    s2, p2_, d2 = 2, 2, 2
    ref2 = _reference(x, weight, bias, stride=s2, padding=p2_, dilation=d2)
    out2 = conv_forward(x, weight, bias, stride=s2, padding=p2_, dilation=d2,
                        compute_dtype=jnp.float32)
    out2 = jax.block_until_ready(out2)
    assert out2.shape == ref2.shape
    np.testing.assert_allclose(np.asarray(out2), np.asarray(ref2),
                               rtol=1e-5, atol=1e-5)

    print("KERNEL_OK")
</pallas_src>

<mosaic_0001>
module attributes {stable_mosaic.version = 11 : i64} {
  func.func @_conv_mm_kernel(%arg0: i32, %arg1: i32, %arg2: memref<32x96xf32, #tpu.memory_space<vmem>>, %arg3: memref<96x128xf32, #tpu.memory_space<vmem>>, %arg4: memref<1x128xf32, #tpu.memory_space<vmem>>, %arg5: memref<32x128xf32, #tpu.memory_space<vmem>>) attributes {dimension_semantics = [#tpu.dimension_semantics<parallel>, #tpu.dimension_semantics<parallel>], iteration_bounds = array<i64: 1, 1>, scalar_prefetch = 0 : i64, scratch_operands = 0 : i64, tpu.core_type = #tpu.core_type<tc>, window_params = [{transform_indices = @transform_0, window_bounds = array<i64: 32, 96>}, {transform_indices = @transform_1, window_bounds = array<i64: 96, 128>}, {transform_indices = @transform_2, window_bounds = array<i64: 1, 128>}, {transform_indices = @transform_3, window_bounds = array<i64: 32, 128>}]} {
    %c0 = arith.constant 0 : index
    %c0_0 = arith.constant 0 : index
    %0 = vector.load %arg2[%c0, %c0_0] : memref<32x96xf32, #tpu.memory_space<vmem>>, vector<32x96xf32>
    %c0_1 = arith.constant 0 : index
    %c0_2 = arith.constant 0 : index
    %1 = vector.load %arg3[%c0_1, %c0_2] : memref<96x128xf32, #tpu.memory_space<vmem>>, vector<96x128xf32>
    %cst = arith.constant dense<0.000000e+00> : vector<32x128xf32>
    %2 = tpu.matmul %0, %1, %cst {dimension_numbers = #tpu.dot_dimension_numbers<[1], [0], [0], [1], [0, 0, 1, 1], [], []>} : vector<32x96xf32>, vector<96x128xf32>, vector<32x128xf32> -> vector<32x128xf32>
    %c0_3 = arith.constant 0 : index
    %c0_4 = arith.constant 0 : index
    %3 = vector.load %arg4[%c0_3, %c0_4] : memref<1x128xf32, #tpu.memory_space<vmem>>, vector<1x128xf32>
    %4 = vector.broadcast %3 : vector<1x128xf32> to vector<32x128xf32>
    %5 = arith.addf %2, %4 : vector<32x128xf32>
    %c0_5 = arith.constant 0 : index
    %c0_6 = arith.constant 0 : index
    %6 = vector.load %arg5[%c0_5, %c0_6] : memref<32x128xf32, #tpu.memory_space<vmem>>, vector<32x128xf32>
    tpu.vector_store %arg5[%c0_5, %c0_6], %5 {strides = array<i32>} : memref<32x128xf32, #tpu.memory_space<vmem>>, vector<32x128xf32>,
    return
  }
  func.func @transform_0(%arg0: i32, %arg1: i32) -> (i32, i32) {
    %c0_i32 = arith.constant 0 : i32
    %c0_i32_0 = arith.constant 0 : i32
    return %arg1, %c0_i32 : i32, i32
  }
  func.func @transform_1(%arg0: i32, %arg1: i32) -> (i32, i32) {
    %c0_i32 = arith.constant 0 : i32
    %c0_i32_0 = arith.constant 0 : i32
    return %c0_i32, %arg0 : i32, i32
  }
  func.func @transform_2(%arg0: i32, %arg1: i32) -> (i32, i32) {
    %c0_i32 = arith.constant 0 : i32
    %c0_i32_0 = arith.constant 0 : i32
    return %c0_i32, %arg0 : i32, i32
  }
  func.func @transform_3(%arg0: i32, %arg1: i32) -> (i32, i32) {
    %c0_i32 = arith.constant 0 : i32
    return %arg1, %arg0 : i32, i32
  }
}

</mosaic_0001>

<bundles_post_ra>
// kernel: tpu_custom_call.1
= control target key start
LH: loop header
LB: loop body
LE: loop exit
PB: predicated region body
PF: predicated region fallthrough
CT: control target
= control target key end

     0   :  { %8 = vsyncpa [#allocation3], 0  ;;  %s427_s0 = inlined_call_operand.hbm [shape: f32[32,96], index: 0, kind: input, shape index: {}]   ;;  %s428_s1 = inlined_call_operand.hbm [shape: f32[96,128], index: 1, kind: input, shape index: {}]   ;;  %s429_s2 = inlined_call_operand.vmem [shape: f32[1,128], index: 2, kind: input, shape index: {}]   ;;  %s430_s3 = inlined_call_operand.hbm [shape: f32[32,128], index: 3, kind: output, shape index: {}]  }
   0x1   :  { %9 = vsyncpa [#allocation6], 0 }
   0x2   :  { %10 = vsyncpa [#allocation4], 0  ;;  %s350_s12 = smov [#allocation2]   ;;  %s278_s16 = scalar_lea.hbm %s427_s0, 512 }
   0x3   :  { %s16_s13 = sshll.u32 %s350_s12, 4  ;;  %p279_p0 = scmp.ne.s32.totalorder %s427_s0, %s278_s16  ;;  %s17_s13 = int_to_ptr.vmem [resolvable:$true] %s16_s13 }
   0x4   :  { %p282_p1 = scmp.lt.u32.totalorder %s278_s16, %s427_s0 }
   0x6   :  { %p284_p2 = pnand %p282_p1, %p279_p0 }
   0x8   :  { %287 = shalt.err (!%p284_p2)
}
   0x9   :  { %s288_s21 = scalar_lea.vmem %s17_s13, 512  ;;  %p293_p4 = scmp.lt.s32.totalorder %s17_s13, %s17_s13 }
   0xa   :  { %p289_p3 = scmp.ne.s32.totalorder %s17_s13, %s288_s21  ;;  %p294_p5 = scmp.lt.s32.totalorder %s288_s21, %s288_s21 }
   0xc   :  { %p295_p6 = por %p294_p5, %p293_p4 }
   0xe   :  { %p296_p7 = pnand %p295_p6, %p289_p3 }
  0x10   :  { %299 = shalt.err (!%p296_p7)
}
  0x11   :  { %s351_s22 = smov 128   ;;  %s352_s23 = smov 8  }
  0x12   :  { %22 = dma.hbm_to_vmem [thread:$0]  %s427_s0, 512, %s17_s13, [#allocation3], %s351_s22, %s351_s22, %s352_s23  }
  0x13   :  { %s353_s26 = smov [#allocation5]   ;;  %s300_s30 = scalar_lea.hbm %s428_s1, 1536 }
  0x14   :  { %s28_s27 = sshll.u32 %s353_s26, 4  ;;  %p301_p8 = scmp.ne.s32.totalorder %s428_s1, %s300_s30  ;;  %s29_s27 = int_to_ptr.vmem [resolvable:$true] %s28_s27 }
  0x15   :  { %p304_p9 = scmp.lt.u32.totalorder %s300_s30, %s428_s1 }
  0x17   :  { %p306_p10 = pnand %p304_p9, %p301_p8 }
  0x19   :  { %309 = shalt.err (!%p306_p10)
}
  0x1a   :  { %s310_s8 = scalar_lea.vmem %s29_s27, 1536  ;;  %p315_p12 = scmp.lt.s32.totalorder %s29_s27, %s29_s27 }
  0x1b   :  { %p311_p11 = scmp.ne.s32.totalorder %s29_s27, %s310_s8  ;;  %p316_p13 = scmp.lt.s32.totalorder %s310_s8, %s310_s8 }
  0x1d   :  { %p317_p0 = por %p316_p13, %p315_p12 }
  0x1f   :  { %p318_p1 = pnand %p317_p0, %p311_p11 }
  0x21   :  { %321 = shalt.err (!%p318_p1)
}
  0x22   :  { %34 = dma.hbm_to_vmem [thread:$0]  %s428_s1, 1536, %s29_s27, [#allocation6], %s351_s22, %s351_s22, %s352_s23  }
  0x23   :  { %344 = dma.done.wait [#allocation3], 512  }
  0x24   :  { %345 = vsyncadd [#allocation3], 4294966784 }
  0x25   :  { %346 = dma.done.wait [#allocation6], 1536  }
  0x26   :  { %347 = vsyncadd [#allocation6], 4294965760  ;;  %v47_v0 = vld [vmem:[#allocation5] sm:$0xff]  ;;  %v48_v1 = vld [vmem:[#allocation5 + $0x8] sm:$0xff]  ;;  %vm66_vm0 = vcmask 785408   ;;  %s354_s11 = smov [#allocation7]  }
  0x27   :  { %v49_v2 = vld [vmem:[#allocation5 + $0x10] sm:$0xff]  ;;  %v237_v3 = vpack.c.bf16 %v48_v1, %v47_v0  ;;  %v50_v4 = vld [vmem:[#allocation5 + $0x18] sm:$0xff]  ;;  %v51_v6 = vld [vmem:[#allocation5 + $0x20] sm:$0xff]  ;;  %s173_s12 = sshll.u32 %s354_s11, 4  ;;  %s174_s12 = int_to_ptr.vmem [resolvable:$true] %s173_s12 }
  0x28   :  { %v241_v5 = vpack.c.bf16 %v50_v4, %v49_v2  ;;  %v52_v7 = vld [vmem:[#allocation5 + $0x28] sm:$0xff]  ;;  %v43_v8 = vld [vmem:[#allocation2] sm:$0xff]  ;;  %v45_v9 = vld [vmem:[#allocation2 + $0x10] sm:$0xff]  ;;  %s322_s13 = scalar_lea.vmem %s174_s12, 512  ;;  %p327_p3 = scmp.lt.s32.totalorder %s174_s12, %s174_s12 }
  0x29   :  { %238 = vmatprep.subr.bf16.mxu0 %v237_v3  ;;  %261 = vmatprep.subr.bf16.mxu1 %v237_v3  ;;  %v245_v10 = vpack.c.bf16 %v52_v7, %v51_v6  ;;  %v53_v11 = vld [vmem:[#allocation5 + $0x30] sm:$0xff]  ;;  %v54_v12 = vld [vmem:[#allocation5 + $0x38] sm:$0xff]  ;;  %v55_v14 = vld [vmem:[#allocation5 + $0x40] sm:$0xff]  ;;  %p323_p2 = scmp.ne.s32.totalorder %s174_s12, %s322_s13  ;;  %p328_p4 = scmp.lt.s32.totalorder %s322_s13, %s322_s13 }
  0x2a   :  { %240 = vmatpush3.bf16.msra.mxu0 %v237_v3  ;;  %267 = vmatpush3.bf16.msra.mxu1 %v237_v3  ;;  %v249_v13 = vpack.c.bf16 %v54_v12, %v53_v11  ;;  %v56_v15 = vld [vmem:[#allocation5 + $0x48] sm:$0xff]  ;;  %v57_v17 = vld [vmem:[#allocation5 + $0x50] sm:$0xff]  ;;  %v58_v18 = vld [vmem:[#allocation5 + $0x58] sm:$0xff] }
  0x2b   :  { %242 = vmatprep.subr.bf16.mxu0 %v241_v5  ;;  %262 = vmatprep.subr.bf16.mxu1 %v241_v5  ;;  %v253_v16 = vpack.c.bf16 %v56_v15, %v55_v14  ;;  %v257_v19 = vpack.c.bf16 %v58_v18, %v57_v17  ;;  %v44_v20 = vld [vmem:[#allocation2 + $0x8] sm:$0xff]  ;;  %v46_v21 = vld [vmem:[#allocation2 + $0x18] sm:$0xff]  ;;  %v186_v22 = vld [vmem:[%s429_s2] ss:$0 sm:$0xff]  ;;  %p329_p5 = por %p328_p4, %p327_p3 }
  0x2c   :  { %231 = vmatprep.mubr.msk.f32.mxu0 %vm66_vm0, %v43_v8  ;;  %234 = vmatprep.mubr.msk.f32.mxu1 %vm66_vm0, %v45_v9 }
  0x2d   :  { %p330_p6 = pnand %p329_p5, %p323_p2 }
  0x2e   :  { %244 = vmatpush3.bf16.msra.mxu0 %v241_v5  ;;  %268 = vmatpush3.bf16.msra.mxu1 %v241_v5 }
  0x2f   :  { %246 = vmatprep.subr.bf16.mxu0 %v245_v10  ;;  %263 = vmatprep.subr.bf16.mxu1 %v245_v10 }
  0x32   :  { %248 = vmatpush3.bf16.msra.mxu0 %v245_v10  ;;  %269 = vmatpush3.bf16.msra.mxu1 %v245_v10 }
  0x33   :  { %250 = vmatprep.subr.bf16.mxu0 %v249_v13  ;;  %264 = vmatprep.subr.bf16.mxu1 %v249_v13 }
  0x36   :  { %252 = vmatpush3.bf16.msra.mxu0 %v249_v13  ;;  %270 = vmatpush3.bf16.msra.mxu1 %v249_v13 }
  0x37   :  { %254 = vmatprep.subr.bf16.mxu0 %v253_v16  ;;  %265 = vmatprep.subr.bf16.mxu1 %v253_v16 }
  0x3a   :  { %256 = vmatpush3.bf16.msra.mxu0 %v253_v16  ;;  %271 = vmatpush3.bf16.msra.mxu1 %v253_v16 }
  0x3b   :  { %258 = vmatprep.subr.bf16.mxu0 %v257_v19  ;;  %266 = vmatprep.subr.bf16.mxu1 %v257_v19 }
  0x3e   :  { %260 = vmatpush3.bf16.msra.mxu0 %v257_v19  ;;  %272 = vmatpush3.bf16.msra.mxu1 %v257_v19 }
  0x41   :  { %232 = vmatmul.mubr.msk.f32.vlgmr.msra.gmra.mrb[0].mxu0 %vm66_vm0, %v44_v20  ;;  %235 = vmatmul.mubr.msk.f32.vlgmr.msra.gmra.mrb[0].mxu1 %vm66_vm0, %v46_v21 }
 0x114   :  { %v233_v23 = vpop.f32.mrb[0].mxu0  ;;  %v236_v24 = vpop.f32.mrb[0].mxu1 }
 0x115   :  { %v151_v25 = vadd.f32 %v233_v23, %v186_v22  ;;  %v161_v26 = vadd.f32 %v236_v24, %v186_v22  ;;  %v145_v27 = vpop.f32.mrb[1].mxu0  ;;  %v155_v28 = vpop.f32.mrb[1].mxu1 }
 0x116   :  { %v146_v29 = vadd.f32 %v186_v22, %v145_v27  ;;  %v156_v30 = vadd.f32 %v186_v22, %v155_v28 }
 0x117   :  { %165 = vst [vmem:[#allocation7 + $0x8] sm:$0xff] %v151_v25  ;;  %167 = vst [vmem:[#allocation7 + $0x18] sm:$0xff] %v161_v26 }
 0x118   :  { %164 = vst [vmem:[#allocation7] sm:$0xff] %v146_v29  ;;  %166 = vst [vmem:[#allocation7 + $0x10] sm:$0xff] %v156_v30 }
 0x119   :  { %333 = shalt.err (!%p330_p6)
}
 0x11a   :  { %s334_s15 = scalar_lea.hbm %s430_s3, 512 }
 0x11b   :  { %p335_p7 = scmp.ne.s32.totalorder %s430_s3, %s334_s15  ;;  %p338_p8 = scmp.lt.u32.totalorder %s334_s15, %s430_s3 }
 0x11d   :  { %p340_p9 = pnand %p338_p8, %p335_p7 }
 0x11f   :  { %343 = shalt.err (!%p340_p9)
}
 0x120   :  { %179 = dma.vmem_to_hbm [thread:$0]  %s174_s12, 512, %s430_s3, [#allocation4], %s351_s22, %s351_s22, %s352_s23  }
 0x121   :  { %348 = dma.done.wait [#allocation4], 512  }
 0x122   :  { %349 = vsyncadd [#allocation4], 4294966784 }
 0x123   :  { %183 = vsyncpa [#allocation3], 1 }
 0x124   :  { %184 = vsyncpa [#allocation6], 1 }
 0x125   :  { %185 = vsyncpa [#allocation4], 1 }

</bundles_post_ra>
